<compile_context>
chip_gen: v7x
topology: tpu7x:2x2x1
jax: 0.10.0
libtpu: 0.0.40
codegen_flags: <defaults>
</compile_context>

<pallas_src>
import jax
import jax.numpy as jnp
from jax.experimental import pallas as pl
from jax.experimental.pallas import tpu as pltpu

BATCH = 16          # fixed by x.view(16, -1) in the PyTorch forward
IN_DIM = 784
HID = 100
OUT = 10
HID_PAD = 128       # lane-dense hidden
OUT_PAD = 128       # lane-dense output


def fcnet_kernel(x_ref, w1_ref, b1_ref, w2_ref, b2_ref, o_ref):
    # x_ref: (16, 784) f32   w1_ref: (784, 128) bf16   b1_ref: (1, 128) f32
    # w2_ref: (128, 128) bf16  b2_ref: (1, 128) f32    o_ref: (16, 128) f32
    x = x_ref[...].astype(jnp.bfloat16)                                   # bf16 MXU input
    h = jnp.dot(x, w1_ref[...], preferred_element_type=jnp.float32) + b1_ref[...]
    h = 0.5 * jnp.tanh(0.5 * h) + 0.5                                     # sigmoid (EUP tanh)
    o = jnp.dot(h.astype(jnp.bfloat16), w2_ref[...],
                preferred_element_type=jnp.float32) + b2_ref[...]
    o_ref[...] = o


def prepare_params(w1, b1, w2, b2):
    """One-time (init-time) weight prep: transpose, zero-pad to lane-dense 128, cast to bf16.

    w1: (100, 784)  b1: (100,)  w2: (10, 100)  b2: (10,)   (PyTorch nn.Linear layout)
    """
    w1p = jnp.zeros((IN_DIM, HID_PAD), jnp.bfloat16).at[:, :HID].set(
        jnp.transpose(w1).astype(jnp.bfloat16))
    b1p = jnp.zeros((1, HID_PAD), jnp.float32).at[:, :HID].set(b1.astype(jnp.float32))
    # rows 100..127 stay zero so the sigmoid(0)=0.5 padded hidden lanes contribute nothing
    w2p = jnp.zeros((HID_PAD, OUT_PAD), jnp.bfloat16).at[:HID, :OUT].set(
        jnp.transpose(w2).astype(jnp.bfloat16))
    b2p = jnp.zeros((1, OUT_PAD), jnp.float32).at[:, :OUT].set(b2.astype(jnp.float32))
    return w1p, b1p, w2p, b2p


def fcnet_forward(x, w1p, b1p, w2p, b2p):
    """x: any shape with 16*784 elements (e.g. NCHW (16,1,28,28)). Returns (16, 10)."""
    x2d = jnp.reshape(x, (BATCH, -1)).astype(jnp.float32)                 # x.view(16, -1)
    assert x2d.shape == (BATCH, IN_DIM), x2d.shape

    vmem_spec = pl.BlockSpec(memory_space=pltpu.MemorySpace.VMEM)
    out_pad = pl.pallas_call(
        fcnet_kernel,
        out_shape=jax.ShapeDtypeStruct((BATCH, OUT_PAD), jnp.float32),
        in_specs=[vmem_spec] * 5,
        out_specs=vmem_spec,
    )(x2d, w1p, b1p, w2p, b2p)
    return out_pad[:, :OUT]


def init_params(key):
    """PyTorch nn.Linear default init: U(-1/sqrt(fan_in), 1/sqrt(fan_in))."""
    k1, k2, k3, k4 = jax.random.split(key, 4)
    bound1 = 1.0 / jnp.sqrt(784.0)
    bound2 = 1.0 / jnp.sqrt(100.0)
    w1 = jax.random.uniform(k1, (HID, IN_DIM), jnp.float32, -bound1, bound1)
    b1 = jax.random.uniform(k2, (HID,), jnp.float32, -bound1, bound1)
    w2 = jax.random.uniform(k3, (OUT, HID), jnp.float32, -bound2, bound2)
    b2 = jax.random.uniform(k4, (OUT,), jnp.float32, -bound2, bound2)
    return w1, b1, w2, b2


def fcnet_reference(x, w1, b1, w2, b2):
    x2d = jnp.reshape(x, (BATCH, -1)).astype(jnp.float32)
    h = jax.nn.sigmoid(x2d @ w1.T + b1)
    return h @ w2.T + b2


if __name__ == "__main__":
    key = jax.random.PRNGKey(0)
    kx, kp = jax.random.split(key)
    # MNIST-style NCHW input; forward's view(16, -1) fixes batch = 16.
    x = jax.random.normal(kx, (BATCH, 1, 28, 28), jnp.float32)
    w1, b1, w2, b2 = init_params(kp)

    # One-time weight prep (outside the per-call hot path).
    w1p, b1p, w2p, b2p = prepare_params(w1, b1, w2, b2)

    out = fcnet_forward(x, w1p, b1p, w2p, b2p)
    out = jax.block_until_ready(out)

    ref = fcnet_reference(x, w1, b1, w2, b2)
    assert out.shape == (BATCH, OUT), out.shape
    # bf16 matmul operands vs f32 reference -> relaxed tolerance.
    assert jnp.allclose(out, ref, atol=2e-2, rtol=2e-2), "mismatch vs reference"
    print("KERNEL_OK")
</pallas_src>

<mosaic_0001>
module attributes {stable_mosaic.version = 11 : i64} {
  func.func @fcnet_kernel(%arg0: memref<16x784xf32, #tpu.memory_space<vmem>>, %arg1: memref<784x128xbf16, #tpu.memory_space<vmem>>, %arg2: memref<1x128xf32, #tpu.memory_space<vmem>>, %arg3: memref<128x128xbf16, #tpu.memory_space<vmem>>, %arg4: memref<1x128xf32, #tpu.memory_space<vmem>>, %arg5: memref<16x128xf32, #tpu.memory_space<vmem>>) attributes {dimension_semantics = [], scalar_prefetch = 0 : i64, scratch_operands = 0 : i64, tpu.core_type = #tpu.core_type<tc>} {
    %c0 = arith.constant 0 : index
    %c0_0 = arith.constant 0 : index
    %0 = vector.load %arg0[%c0, %c0_0] : memref<16x784xf32, #tpu.memory_space<vmem>>, vector<16x784xf32>
    %1 = arith.truncf %0 : vector<16x784xf32> to vector<16x784xbf16>
    %c0_1 = arith.constant 0 : index
    %c0_2 = arith.constant 0 : index
    %2 = vector.load %arg1[%c0_1, %c0_2] : memref<784x128xbf16, #tpu.memory_space<vmem>>, vector<784x128xbf16>
    %cst = arith.constant dense<0.000000e+00> : vector<16x128xf32>
    %3 = tpu.matmul %1, %2, %cst {dimension_numbers = #tpu.dot_dimension_numbers<[1], [0], [0], [1], [0, 0, 1, 1], [], []>} : vector<16x784xbf16>, vector<784x128xbf16>, vector<16x128xf32> -> vector<16x128xf32>
    %c0_3 = arith.constant 0 : index
    %c0_4 = arith.constant 0 : index
    %4 = vector.load %arg2[%c0_3, %c0_4] : memref<1x128xf32, #tpu.memory_space<vmem>>, vector<1x128xf32>
    %5 = vector.broadcast %4 : vector<1x128xf32> to vector<16x128xf32>
    %6 = arith.addf %3, %5 : vector<16x128xf32>
    %cst_5 = arith.constant 5.000000e-01 : f32
    %7 = vector.broadcast %cst_5 : f32 to vector<16x128xf32>
    %8 = arith.mulf %7, %6 : vector<16x128xf32>
    %9 = math.tanh %8 : vector<16x128xf32>
    %cst_6 = arith.constant 5.000000e-01 : f32
    %10 = vector.broadcast %cst_6 : f32 to vector<16x128xf32>
    %11 = arith.mulf %10, %9 : vector<16x128xf32>
    %cst_7 = arith.constant 5.000000e-01 : f32
    %12 = vector.broadcast %cst_7 : f32 to vector<16x128xf32>
    %13 = arith.addf %11, %12 : vector<16x128xf32>
    %14 = arith.truncf %13 : vector<16x128xf32> to vector<16x128xbf16>
    %c0_8 = arith.constant 0 : index
    %c0_9 = arith.constant 0 : index
    %15 = vector.load %arg3[%c0_8, %c0_9] : memref<128x128xbf16, #tpu.memory_space<vmem>>, vector<128x128xbf16>
    %cst_10 = arith.constant dense<0.000000e+00> : vector<16x128xf32>
    %16 = tpu.matmul %14, %15, %cst_10 {dimension_numbers = #tpu.dot_dimension_numbers<[1], [0], [0], [1], [0, 0, 1, 1], [], []>} : vector<16x128xbf16>, vector<128x128xbf16>, vector<16x128xf32> -> vector<16x128xf32>
    %c0_11 = arith.constant 0 : index
    %c0_12 = arith.constant 0 : index
    %17 = vector.load %arg4[%c0_11, %c0_12] : memref<1x128xf32, #tpu.memory_space<vmem>>, vector<1x128xf32>
    %18 = vector.broadcast %17 : vector<1x128xf32> to vector<16x128xf32>
    %19 = arith.addf %16, %18 : vector<16x128xf32>
    %c0_13 = arith.constant 0 : index
    %c0_14 = arith.constant 0 : index
    %20 = vector.load %arg5[%c0_13, %c0_14] : memref<16x128xf32, #tpu.memory_space<vmem>>, vector<16x128xf32>
    tpu.vector_store %arg5[%c0_13, %c0_14], %19 {strides = array<i32>} : memref<16x128xf32, #tpu.memory_space<vmem>>, vector<16x128xf32>,
    return
  }
}

</mosaic_0001>

<bundles_post_ra>
// kernel: tpu_custom_call.1
= control target key start
LH: loop header
LB: loop body
LE: loop exit
PB: predicated region body
PF: predicated region fallthrough
CT: control target
= control target key end

     0   :  { %10 = vsyncpa [#allocation3], 0  ;;  %s1237_s0 = inlined_call_operand.hbm [shape: f32[16,784], index: 0, kind: input, shape index: {}]   ;;  %s1238_s1 = inlined_call_operand.hbm [shape: bf16[784,128], index: 1, kind: input, shape index: {}]   ;;  %s1239_s2 = inlined_call_operand.vmem [shape: f32[1,128], index: 2, kind: input, shape index: {}]   ;;  %s1240_s3 = inlined_call_operand.hbm [shape: bf16[128,128], index: 3, kind: input, shape index: {}]   ;;  %s1241_s4 = inlined_call_operand.vmem [shape: f32[1,128], index: 4, kind: input, shape index: {}]   ;;  %s1242_s5 = inlined_call_operand.hbm [shape: f32[16,128], index: 5, kind: output, shape index: {}]  }
   0x1   :  { %11 = vsyncpa [#allocation6], 0 }
   0x2   :  { %12 = vsyncpa [#allocation4], 0  ;;  %s1122_s18 = smov [#allocation5]   ;;  %s1028_s22 = scalar_lea.hbm %s1238_s1, 6272 }
   0x3   :  { %s30_s19 = sshll.u32 %s1122_s18, 4  ;;  %p1029_p0 = scmp.ne.s32.totalorder %s1238_s1, %s1028_s22  ;;  %s31_s19 = int_to_ptr.vmem [resolvable:$true] %s30_s19 }
   0x4   :  { %p1032_p1 = scmp.lt.u32.totalorder %s1028_s22, %s1238_s1 }
   0x6   :  { %p1034_p2 = pnand %p1032_p1, %p1029_p0 }
   0x8   :  { %1037 = shalt.err (!%p1034_p2)
}
   0x9   :  { %s1038_s27 = scalar_lea.vmem %s31_s19, 6272  ;;  %p1043_p4 = scmp.lt.s32.totalorder %s31_s19, %s31_s19 }
   0xa   :  { %p1039_p3 = scmp.ne.s32.totalorder %s31_s19, %s1038_s27  ;;  %p1044_p5 = scmp.lt.s32.totalorder %s1038_s27, %s1038_s27 }
   0xc   :  { %p1045_p6 = por %p1044_p5, %p1043_p4 }
   0xe   :  { %p1046_p7 = pnand %p1045_p6, %p1039_p3 }
  0x10   :  { %1049 = shalt.err (!%p1046_p7)
}
  0x11   :  { %s1123_s28 = smov 64   ;;  %s1124_s29 = smov 4  }
  0x12   :  { %36 = dma.hbm_to_vmem [thread:$0]  %s1238_s1, 6272, %s31_s19, [#allocation6], %s1123_s28, %s1123_s28, %s1124_s29  }
  0x13   :  { %s1125_s7 = smov [#allocation2]   ;;  %s1050_s11 = scalar_lea.hbm %s1237_s0, 1792 }
  0x14   :  { %s18_s8 = sshll.u32 %s1125_s7, 4  ;;  %p1051_p8 = scmp.ne.s32.totalorder %s1237_s0, %s1050_s11  ;;  %s19_s8 = int_to_ptr.vmem [resolvable:$true] %s18_s8 }
  0x15   :  { %p1054_p9 = scmp.lt.u32.totalorder %s1050_s11, %s1237_s0 }
  0x17   :  { %p1056_p10 = pnand %p1054_p9, %p1051_p8 }
  0x19   :  { %1059 = shalt.err (!%p1056_p10)
}
  0x1a   :  { %s1060_s16 = scalar_lea.vmem %s19_s8, 1792  ;;  %p1065_p12 = scmp.lt.s32.totalorder %s19_s8, %s19_s8 }
  0x1b   :  { %p1061_p11 = scmp.ne.s32.totalorder %s19_s8, %s1060_s16  ;;  %p1066_p13 = scmp.lt.s32.totalorder %s1060_s16, %s1060_s16 }
  0x1d   :  { %p1067_p0 = por %p1066_p13, %p1065_p12 }
  0x1f   :  { %p1068_p1 = pnand %p1067_p0, %p1061_p11 }
  0x21   :  { %1071 = shalt.err (!%p1068_p1)
}
  0x22   :  { %s1126_s1 = smov 896   ;;  %s1127_s17 = smov 56  }
  0x23   :  { %24 = dma.hbm_to_vmem [thread:$0]  %s1237_s0, 1792, %s19_s8, [#allocation3], %s1126_s1, %s1126_s1, %s1127_s17  }
  0x24   :  { %s1128_s20 = smov [#allocation7]   ;;  %s1072_s24 = scalar_lea.hbm %s1240_s3, 1024 }
  0x25   :  { %s44_s21 = sshll.u32 %s1128_s20, 4  ;;  %p1073_p2 = scmp.ne.s32.totalorder %s1240_s3, %s1072_s24  ;;  %s45_s21 = int_to_ptr.vmem [resolvable:$true] %s44_s21 }
  0x26   :  { %p1076_p3 = scmp.lt.u32.totalorder %s1072_s24, %s1240_s3 }
  0x28   :  { %p1078_p4 = pnand %p1076_p3, %p1073_p2 }
  0x2a   :  { %1081 = shalt.err (!%p1078_p4)
}
  0x2b   :  { %s1082_s6 = scalar_lea.vmem %s45_s21, 1024  ;;  %p1087_p6 = scmp.lt.s32.totalorder %s45_s21, %s45_s21 }
  0x2c   :  { %p1083_p5 = scmp.ne.s32.totalorder %s45_s21, %s1082_s6  ;;  %p1088_p7 = scmp.lt.s32.totalorder %s1082_s6, %s1082_s6 }
  0x2e   :  { %p1089_p8 = por %p1088_p7, %p1087_p6 }
  0x30   :  { %p1090_p9 = pnand %p1089_p8, %p1083_p5 }
  0x32   :  { %1093 = shalt.err (!%p1090_p9)
}
  0x33   :  { %50 = dma.hbm_to_vmem [thread:$0]  %s1240_s3, 1024, %s45_s21, [#allocation6], %s1123_s28, %s1123_s28, %s1124_s29  }
  0x34   :  { %1116 = dma.done.wait [#allocation3], 1792  }
  0x35   :  { %1117 = vsyncadd [#allocation3], 4294965504 }
  0x36   :  { %1118 = dma.done.wait [#allocation6], 7296  }
  0x37   :  { %1119 = vsyncadd [#allocation6], 4294960000  ;;  %v967_v0 = vld [vmem:[#allocation5 + $0x40] sm:$0xff]   ;;  %v971_v4 = vld [vmem:[#allocation5 + $0x48] sm:$0xff]   ;;  %v1129_v43 = vmov 0.0   ;;  %vm1130_vm0 = vmmov 0  }
  0x38   :  { %v968_v1 = vld [vmem:[#allocation5] sm:$0xff]   ;;  %852 = vmatprep.subr.bf16.mxu0 %v967_v0  ;;  %v972_v5 = vld [vmem:[#allocation5 + $0x8] sm:$0xff]   ;;  %v975_v8 = vld [vmem:[#allocation5 + $0x50] sm:$0xff]   ;;  %vm483_vm1 = vcmask 130048   ;;  %s1131_s8 = smov [#allocation8]  }
  0x39   :  { %v969_v2 = vld [vmem:[#allocation5 + $0xc0] sm:$0xff]   ;;  %853 = vmatpush3.bf16.msra.mxu0 %v968_v1  ;;  %v973_v6 = vld [vmem:[#allocation5 + $0xc8] sm:$0xff]   ;;  %v976_v9 = vld [vmem:[#allocation5 + $0x10] sm:$0xff]   ;;  %s779_s9 = sshll.u32 %s1131_s8, 4  ;;  %s780_s9 = int_to_ptr.vmem [resolvable:$true] %s779_s9 }
  0x3a   :  { %v970_v3 = vld [vmem:[#allocation5 + $0x80] sm:$0xff]   ;;  %874 = vmatprep.subr.bf16.mxu1 %v969_v2  ;;  %854 = vmatprep.subr.bf16.mxu0 %v971_v4  ;;  %v974_v7 = vld [vmem:[#allocation5 + $0x88] sm:$0xff]   ;;  %v977_v10 = vld [vmem:[#allocation5 + $0xd0] sm:$0xff]   ;;  %s1094_s10 = scalar_lea.vmem %s780_s9, 256  ;;  %p1099_p11 = scmp.lt.s32.totalorder %s780_s9, %s780_s9 }
  0x3b   :  { %875 = vmatpush3.bf16.msra.mxu1 %v970_v3  ;;  %v978_v11 = vld [vmem:[#allocation5 + $0x90] sm:$0xff]   ;;  %v979_v12 = vld [vmem:[#allocation5 + $0x58] sm:$0xff]   ;;  %v983_v16 = vld [vmem:[#allocation5 + $0x60] sm:$0xff]   ;;  %p1095_p10 = scmp.ne.s32.totalorder %s780_s9, %s1094_s10  ;;  %p1100_p12 = scmp.lt.s32.totalorder %s1094_s10, %s1094_s10 }
  0x3c   :  { %876 = vmatprep.subr.bf16.mxu1 %v973_v6  ;;  %v980_v13 = vld [vmem:[#allocation5 + $0x18] sm:$0xff]   ;;  %v984_v17 = vld [vmem:[#allocation5 + $0x20] sm:$0xff]   ;;  %v987_v20 = vld [vmem:[#allocation5 + $0x68] sm:$0xff]  }
  0x3d   :  { %855 = vmatpush3.bf16.msra.mxu0 %v972_v5  ;;  %v981_v14 = vld [vmem:[#allocation5 + $0xd8] sm:$0xff]   ;;  %v985_v18 = vld [vmem:[#allocation5 + $0xe0] sm:$0xff]   ;;  %v988_v21 = vld [vmem:[#allocation5 + $0x28] sm:$0xff]   ;;  %p1101_p13 = por %p1100_p12, %p1099_p11 }
  0x3e   :  { %856 = vmatprep.subr.bf16.mxu0 %v975_v8  ;;  %v982_v15 = vld [vmem:[#allocation5 + $0x98] sm:$0xff]   ;;  %v986_v19 = vld [vmem:[#allocation5 + $0xa0] sm:$0xff]   ;;  %v989_v22 = vld [vmem:[#allocation5 + $0xe8] sm:$0xff]  }
  0x3f   :  { %877 = vmatpush3.bf16.msra.mxu1 %v974_v7  ;;  %v990_v23 = vld [vmem:[#allocation5 + $0xa8] sm:$0xff]   ;;  %v991_v24 = vld [vmem:[#allocation5 + $0x70] sm:$0xff]   ;;  %v995_v28 = vld [vmem:[#allocation5 + $0x78] sm:$0xff]   ;;  %p1102_p0 = pnand %p1101_p13, %p1095_p10 }
  0x40   :  { %878 = vmatprep.subr.bf16.mxu1 %v977_v10  ;;  %v992_v25 = vld [vmem:[#allocation5 + $0x30] sm:$0xff]   ;;  %v996_v29 = vld [vmem:[#allocation5 + $0x38] sm:$0xff]   ;;  %v70_v36 = vld [vmem:[#allocation2 + $0x38] sm:$0xff] }
  0x41   :  { %857 = vmatpush3.bf16.msra.mxu0 %v976_v9  ;;  %v993_v26 = vld [vmem:[#allocation5 + $0xf0] sm:$0xff]   ;;  %v997_v30 = vld [vmem:[#allocation5 + $0xf8] sm:$0xff]   ;;  %v999_v38 = vld [vmem:[#allocation5 + $0x140] sm:$0xff]  }
  0x42   :  { %858 = vmatprep.subr.bf16.mxu0 %v979_v12  ;;  %v994_v27 = vld [vmem:[#allocation5 + $0xb0] sm:$0xff]   ;;  %v64_v31 = vld [vmem:[#allocation2 + $0x8] sm:$0xff]  ;;  %v66_v39 = vld [vmem:[#allocation2 + $0x18] sm:$0xff] }
  0x43   :  { %879 = vmatpush3.bf16.msra.mxu1 %v978_v11  ;;  %v71_v32 = vld [vmem:[#allocation2 + $0x40] sm:$0xff]  ;;  %v998_v34 = vld [vmem:[#allocation5 + $0xb8] sm:$0xff]   ;;  %v73_v40 = vld [vmem:[#allocation2 + $0x50] sm:$0xff] }
  0x44   :  { %880 = vmatprep.subr.bf16.mxu1 %v981_v14  ;;  %v78_v33 = vpack.c.bf16 %v71_v32, %v64_v31  ;;  %v63_v35 = vld [vmem:[#allocation2] sm:$0xff]  ;;  %v80_v41 = vpack.c.bf16 %v73_v40, %v66_v39  ;;  %v1000_v42 = vld [vmem:[#allocation5 + $0x100] sm:$0xff]   ;;  %v72_v45 = vld [vmem:[#allocation2 + $0x48] sm:$0xff] }
  0x45   :  { %859 = vmatpush3.bf16.msra.mxu0 %v980_v13  ;;  %v77_v37 = vpack.c.bf16 %v70_v36, %v63_v35  ;;  %v65_v44 = vld [vmem:[#allocation2 + $0x10] sm:$0xff]  ;;  %v1001_v47 = vld [vmem:[#allocation5 + $0x148] sm:$0xff]   ;;  %v1003_v49 = vld [vmem:[#allocation5 + $0x150] sm:$0xff]  }
  0x46   :  { %860 = vmatprep.subr.bf16.mxu0 %v983_v16  ;;  %519 = vmatprep.mubr.bf16.mxu0 %v78_v33  ;;  %v79_v46 = vpack.c.bf16 %v72_v45, %v65_v44  ;;  %v1002_v48 = vld [vmem:[#allocation5 + $0x108] sm:$0xff]   ;;  %v1004_v50 = vld [vmem:[#allocation5 + $0x110] sm:$0xff]   ;;  %v1005_v51 = vld [vmem:[#allocation5 + $0x158] sm:$0xff]  }
  0x47   :  { %881 = vmatpush3.bf16.msra.mxu1 %v982_v15  ;;  %560 = vmatprep.mubr.bf16.mxu1 %v80_v41  ;;  %v1006_v52 = vld [vmem:[#allocation5 + $0x118] sm:$0xff]   ;;  %v1007_v53 = vld [vmem:[#allocation5 + $0x160] sm:$0xff]   ;;  %v1009_v55 = vld [vmem:[#allocation5 + $0x168] sm:$0xff]  }
  0x48   :  { %882 = vmatprep.subr.bf16.mxu1 %v985_v18  ;;  %v1008_v54 = vld [vmem:[#allocation5 + $0x120] sm:$0xff]   ;;  %v68_v57 = vld [vmem:[#allocation2 + $0x28] sm:$0xff]  ;;  %v1010_v58 = vld [vmem:[#allocation5 + $0x128] sm:$0xff]  }
  0x49   :  { %861 = vmatpush3.bf16.msra.mxu0 %v984_v17  ;;  %v1015_v56 = vld [vmem:[#allocation5 + $0x180] sm:$0xff]   ;;  %v1011_v59 = vld [vmem:[#allocation5 + $0x170] sm:$0xff]   ;;  %v76_v63 = vld [vmem:[#allocation2 + $0x68] sm:$0xff] }
  0x4a   :  { %862 = vmatprep.subr.bf16.mxu0 %v987_v20  ;;  %v75_v60 = vld [vmem:[#allocation2 + $0x60] sm:$0xff]  ;;  %v69_v62 = vld [vmem:[#allocation2 + $0x30] sm:$0xff]  ;;  %v1013_v2 = vld [vmem:[#allocation5 + $0x178] sm:$0xff]  }
  0x4b   :  { %883 = vmatpush3.bf16.msra.mxu1 %v986_v19  ;;  %v82_v61 = vpack.c.bf16 %v75_v60, %v68_v57  ;;  %v83_v0 = vpack.c.bf16 %v76_v63, %v69_v62  ;;  %v1012_v1 = vld [vmem:[#allocation5 + $0x130] sm:$0xff]   ;;  %v1014_v3 = vld [vmem:[#allocation5 + $0x138] sm:$0xff]   ;;  %v74_v5 = vld [vmem:[#allocation2 + $0x58] sm:$0xff] }
  0x4c   :  { %884 = vmatprep.subr.bf16.mxu1 %v989_v22  ;;  %v67_v4 = vld [vmem:[#allocation2 + $0x20] sm:$0xff]  ;;  %v1016_v7 = vld [vmem:[#allocation7] sm:$0xff]   ;;  %v1018_v9 = vld [vmem:[#allocation7 + $0x10] sm:$0xff]  }
  0x4d   :  { %863 = vmatpush3.bf16.msra.mxu0 %v988_v21  ;;  %v81_v6 = vpack.c.bf16 %v74_v5, %v67_v4  ;;  %v1017_v8 = vld [vmem:[#allocation7 + $0x8] sm:$0xff]   ;;  %v1019_v10 = vld [vmem:[#allocation7 + $0x18] sm:$0xff]   ;;  %v1020_v11 = vld [vmem:[#allocation7 + $0x20] sm:$0xff]  }
  0x4e   :  { %864 = vmatprep.subr.bf16.mxu0 %v991_v24  ;;  %v1021_v12 = vld [vmem:[#allocation7 + $0x28] sm:$0xff]   ;;  %v1022_v13 = vld [vmem:[#allocation7 + $0x30] sm:$0xff]   ;;  %v1023_v14 = vld [vmem:[#allocation7 + $0x38] sm:$0xff]  }
  0x4f   :  { %885 = vmatpush3.bf16.msra.mxu1 %v990_v23  ;;  %v792_v16 = vld [vmem:[%s1239_s2] ss:$0 sm:$0xff] }
  0x50   :  { %886 = vmatprep.subr.bf16.mxu1 %v993_v26 }
  0x51   :  { %865 = vmatpush3.bf16.msra.mxu0 %v992_v25 }
  0x52   :  { %866 = vmatprep.subr.bf16.mxu0 %v995_v28 }
  0x53   :  { %887 = vmatpush3.bf16.msra.mxu1 %v994_v27 }
  0x54   :  { %888 = vmatprep.subr.bf16.mxu1 %v997_v30 }
  0x55   :  { %867 = vmatpush3.bf16.msra.mxu0 %v996_v29 }
  0x56   :  { %896 = vmatprep.subr.bf16.mxu0 %v999_v38 }
  0x57   :  { %889 = vmatpush3.bf16.msra.mxu1 %v998_v34 }
  0x58   :  { %929 = vmatprep.subr.bf16.mxu1 %v1129_v43  ;;  %520 = vmatmul.mubr.bf16.vlgmr.msra.gmra.mrb[0].mxu0 %v77_v37 }
  0x59   :  { %897 = vmatpush3.bf16.msra.mxu0 %v1000_v42  ;;  %601 = vmatprep.mubr.bf16.mxu0 %v82_v61 }
  0x5a   :  { %561 = vmatmul.mubr.bf16.vlgmr.msra.gmra.mrb[0].mxu1 %v79_v46  ;;  %898 = vmatprep.subr.bf16.mxu0 %v1001_v47 }
  0x5b   :  { %931 = vmatprep.mubr.msk.bf16.mxu1 %vm1130_vm0, %v1129_v43  ;;  %930 = vmatpush3.bf16.msra.mxu1 %v1015_v56 }
  0x5c   :  { %935 = vmatprep.subr.bf16.mxu1 %v1129_v43 }
  0x5d   :  { %899 = vmatpush3.bf16.msra.mxu0 %v1002_v48 }
  0x5e   :  { %900 = vmatprep.subr.bf16.mxu0 %v1003_v49 }
  0x61   :  { %901 = vmatpush3.bf16.msra.mxu0 %v1004_v50 }
  0x62   :  { %902 = vmatprep.subr.bf16.mxu0 %v1005_v51  ;;  %932 = vmatmul.mubr.msk.bf16.vlgmr.msra.gmra.mrb[4].mxu1 %vm483_vm1, %v83_v0 }
  0x63   :  { %951 = vmatprep.mubr.msk.bf16.mxu1 %vm1130_vm0, %v1129_v43  ;;  %936 = vmatpush3.bf16.msra.mxu1 %v1016_v7 }
  0x64   :  { %937 = vmatprep.subr.bf16.mxu1 %v1129_v43 }
  0x65   :  { %903 = vmatpush3.bf16.msra.mxu0 %v1006_v52 }
  0x66   :  { %904 = vmatprep.subr.bf16.mxu0 %v1007_v53 }
  0x67   :  { %938 = vmatpush3.bf16.msra.mxu1 %v1017_v8 }
  0x68   :  { %939 = vmatprep.subr.bf16.mxu1 %v1129_v43 }
  0x69   :  { %905 = vmatpush3.bf16.msra.mxu0 %v1008_v54 }
  0x6a   :  { %906 = vmatprep.subr.bf16.mxu0 %v1009_v55  ;;  %v843_v55 = vld [vmem:[%s1241_s4] ss:$0 sm:$0xff] }
  0x6b   :  { %940 = vmatpush3.bf16.msra.mxu1 %v1018_v9 }
  0x6c   :  { %941 = vmatprep.subr.bf16.mxu1 %v1129_v43 }
  0x6d   :  { %907 = vmatpush3.bf16.msra.mxu0 %v1010_v58 }
  0x6e   :  { %908 = vmatprep.subr.bf16.mxu0 %v1011_v59 }
  0x6f   :  { %942 = vmatpush3.bf16.msra.mxu1 %v1019_v10 }
  0x70   :  { %943 = vmatprep.subr.bf16.mxu1 %v1129_v43 }
  0x71   :  { %909 = vmatpush3.bf16.msra.mxu0 %v1012_v1 }
  0x72   :  { %910 = vmatprep.subr.bf16.mxu0 %v1013_v2 }
  0x73   :  { %944 = vmatpush3.bf16.msra.mxu1 %v1020_v11 }
  0x74   :  { %945 = vmatprep.subr.bf16.mxu1 %v1129_v43 }
  0x75   :  { %911 = vmatpush3.bf16.msra.mxu0 %v1014_v3 }
  0x77   :  { %946 = vmatpush3.bf16.msra.mxu1 %v1021_v12 }
  0x78   :  { %602 = vmatmul.mubr.bf16.vlgmr.msra.gmra.mrb[4].mxu0 %v81_v6  ;;  %947 = vmatprep.subr.bf16.mxu1 %v1129_v43 }
  0x7b   :  { %948 = vmatpush3.bf16.msra.mxu1 %v1022_v13 }
  0x7c   :  { %949 = vmatprep.subr.bf16.mxu1 %v1129_v43 }
  0x7f   :  { %950 = vmatpush3.bf16.msra.mxu1 %v1023_v14 }
 0x12b   :  { %v868_v15 = vpop.f32.mrb[0].mxu0 }
 0x12c   :  { %v869_v17 = vpop.f32.mrb[1].mxu0 }
 0x12d   :  { %v870_v18 = vadd.f32 %v869_v17, %v868_v15  ;;  %v871_v19 = vpop.f32.mrb[2].mxu0  ;;  %v890_v20 = vpop.f32.mrb[0].mxu1 }
 0x12e   :  { %v872_v21 = vpop.f32.mrb[3].mxu0  ;;  %v891_v24 = vpop.f32.mrb[1].mxu1 }
 0x12f   :  { %v522_v22 = vadd.f32 %v870_v18, %v792_v16  ;;  %v873_v23 = vadd.f32 %v872_v21, %v871_v19  ;;  %v892_v25 = vadd.f32 %v891_v24, %v890_v20  ;;  %v893_v26 = vpop.f32.mrb[2].mxu1 }
 0x130   :  { %v894_v28 = vpop.f32.mrb[3].mxu1 }
 0x131   :  { %v525_v27 = vadd.f32 %v873_v23, %v792_v16  ;;  %v563_v29 = vadd.f32 %v892_v25, %v522_v22  ;;  %v895_v30 = vadd.f32 %v894_v28, %v893_v26 }
 0x133   :  { %v566_v31 = vadd.f32 %v895_v30, %v525_v27 }
 0x135   :  { %v644_v32 = vpop.f32.mrb[4].mxu1 }
 0x136   :  { %v933_v33 = vpop.f32.mrb[5].mxu1 }
 0x137   :  { %v647_v34 = vpop.f32.mrb[6].mxu1 }
 0x138   :  { %v934_v35 = vpop.f32.mrb[7].mxu1 }
 0x14b   :  { %v912_v36 = vpop.f32.mrb[4].mxu0 }
 0x14c   :  { %v913_v37 = vpop.f32.mrb[5].mxu0 }
 0x14d   :  { %v914_v38 = vadd.f32 %v913_v37, %v912_v36  ;;  %v915_v39 = vpop.f32.mrb[6].mxu0 }
 0x14e   :  { %v916_v40 = vpop.f32.mrb[7].mxu0 }
 0x14f   :  { %v604_v41 = vadd.f32 %v914_v38, %v563_v29  ;;  %v917_v42 = vadd.f32 %v916_v40, %v915_v39 }
 0x151   :  { %v645_v43 = vadd.f32 %v644_v32, %v604_v41  ;;  %v607_v44 = vadd.f32 %v917_v42, %v566_v31 }
 0x153   :  { %v651_v45 = vmul.f32 0.5, %v645_v43  ;;  %v648_v46 = vadd.f32 %v647_v34, %v607_v44 }
 0x155   :  { %1024 = vtanh.f32 %v651_v45  ;;  %v652_v47 = vmul.f32 0.5, %v648_v46 }
 0x157   :  { %1026 = vtanh.f32 %v652_v47 }
 0x15f   :  { %v1025_v48 = vpop.eup %1024 }
 0x160   :  { %v655_v49 = vmul.f32 0.5, %v1025_v48 }
 0x161   :  { %v1027_v50 = vpop.eup %1026 }
 0x162   :  { %v656_v51 = vmul.f32 0.5, %v1027_v50  ;;  %v657_v52 = vadd.f32 0.5, %v655_v49 }
 0x164   :  { %v658_v53 = vadd.f32 0.5, %v656_v51 }
 0x166   :  { %v659_v54 = vpack.c.bf16 %v658_v53, %v657_v52 }
 0x168   :  { %952 = vmatmul.mubr.bf16.vlgmr.msra.gmra.mrb[8].mxu1 %v659_v54 }
 0x23b   :  { %v765_v56 = vpop.f32.mrb[8].mxu1 }
 0x23c   :  { %v766_v57 = vadd.f32 %v843_v55, %v765_v56  ;;  %v953_v58 = vpop.f32.mrb[9].mxu1 }
 0x23d   :  { %v768_v59 = vpop.f32.mrb[10].mxu1 }
 0x23e   :  { %772 = vst [vmem:[#allocation8] sm:$0xff] %v766_v57  ;;  %v769_v60 = vadd.f32 %v843_v55, %v768_v59  ;;  %v954_v61 = vpop.f32.mrb[11].mxu1 }
 0x240   :  { %773 = vst [vmem:[#allocation8 + $0x8] sm:$0xff] %v769_v60 }
 0x241   :  { %1105 = shalt.err (!%p1102_p0)
}
 0x242   :  { %s1106_s12 = scalar_lea.hbm %s1242_s5, 256 }
 0x243   :  { %p1107_p1 = scmp.ne.s32.totalorder %s1242_s5, %s1106_s12  ;;  %p1110_p2 = scmp.lt.u32.totalorder %s1106_s12, %s1242_s5 }
 0x245   :  { %p1112_p3 = pnand %p1110_p2, %p1107_p1 }
 0x247   :  { %1115 = shalt.err (!%p1112_p3)
}
 0x248   :  { %s1132_s1 = smov 128   ;;  %s1133_s17 = smov 8  }
 0x249   :  { %785 = dma.vmem_to_hbm [thread:$0]  %s780_s9, 256, %s1242_s5, [#allocation4], %s1132_s1, %s1132_s1, %s1133_s17  }
 0x24a   :  { %1120 = dma.done.wait [#allocation4], 256  }
 0x24b   :  { %1121 = vsyncadd [#allocation4], 4294967040 }
 0x24c   :  { %789 = vsyncpa [#allocation3], 1 }
 0x24d   :  { %790 = vsyncpa [#allocation6], 1 }
 0x24e   :  { %791 = vsyncpa [#allocation4], 1 }

</bundles_post_ra>
